<compile_context>
chip_gen: v6e
topology: v6e:2x2x1
jax: 0.10.0
libtpu: 0.0.40
codegen_flags: <defaults>
</compile_context>

<pallas_src>
import jax
import jax.numpy as jnp
from jax.experimental import pallas as pl
from jax.experimental.pallas import tpu as pltpu


def _round_up(x: int, m: int) -> int:
    return ((x + m - 1) // m) * m


def _value_kernel(s_ref, w1_ref, b1_ref, w2_ref, b2_ref, w3_ref, b3_ref, o_ref):
    # Layer 1: (TILE_B, D)bf16 @ (D, H)bf16 -> f32 acc; bias + ReLU in f32.
    h1 = jnp.dot(s_ref[...], w1_ref[...], preferred_element_type=jnp.float32)
    h1 = jnp.maximum(h1 + b1_ref[...], 0.0)

    # Layer 2: (TILE_B, H)bf16 @ (H, H)bf16 -> f32 acc; bias + ReLU in f32.
    h2 = jnp.dot(h1.astype(jnp.bfloat16), w2_ref[...],
                 preferred_element_type=jnp.float32)
    h2 = jnp.maximum(h2 + b2_ref[...], 0.0)

    # Layer 3: contract h2's H axis against the w3 row on the MXU, producing a
    # lane-dense (1, TILE_B) result directly — no in-kernel transpose, no XLU.
    v = jax.lax.dot_general(
        w3_ref[...], h2,
        dimension_numbers=(((1,), (1,)), ((), ())),
        preferred_element_type=jnp.float32)                 # (1, TILE_B)
    o_ref[...] = (v + b3_ref[0, 0])[None].astype(o_ref.dtype)  # (1, 1, TILE_B)


def value_function_forward(state, params, *, tile_b=2048,
                           vmem_limit_bytes=48 << 20):
    """Fused MLP forward. state: (B, state_dim) f32 -> (B,) f32."""
    w1, b1, w2, b2, w3, b3 = params
    B, D = state.shape
    H = w1.shape[1]

    # Tile granularity 128 so the output block's lane width is a multiple of
    # 128 (fully dense, unmasked stores).
    b_ceil = _round_up(B, 128)
    tile_b = max(128, min(_round_up(tile_b, 128), b_ceil))
    # Ensure >= 2 grid steps when there is enough batch for two lane tiles, so
    # the "parallel" batch axis can shard across v7x's two TensorCores.
    if b_ceil >= 2 * 128 and b_ceil <= tile_b:
        tile_b = _round_up(pl.cdiv(b_ceil, 2), 128)
    num_tiles = pl.cdiv(b_ceil, tile_b)
    b_pad = num_tiles * tile_b
    if b_pad != B:
        state = jnp.pad(state, ((0, b_pad - B), (0, 0)))

    # bf16 inputs for the MXU on layers 1/2 (f32 accumulation in-kernel).
    state_bf = state.astype(jnp.bfloat16)
    w1_bf = w1.astype(jnp.bfloat16)
    w2_bf = w2.astype(jnp.bfloat16)
    b1_f = b1.reshape(1, H).astype(jnp.float32)
    b2_f = b2.reshape(1, H).astype(jnp.float32)
    w3_row = w3.reshape(1, H).astype(jnp.float32)   # f32 layer-3 contraction
    b3_sc = b3.reshape(1, 1).astype(jnp.float32)    # scalar, goes to SMEM

    # TODO(synk): if H is ever non-MXU-aligned (not a multiple of 128/256),
    # zero-pad H in the weights here; semantics-preserving, not needed for the
    # typical H in {64, 256, ...} configurations.

    flops = 2 * b_pad * (D * H + H * H + H)
    bytes_accessed = (b_pad * D * 2                      # state stream (bf16)
                      + (D * H + H * H) * 2              # W1, W2 (bf16)
                      + (2 * H + H + 1) * 4              # biases + w3 row (f32)
                      + b_pad * 4)                       # output (f32)

    out = pl.pallas_call(
        _value_kernel,
        out_shape=jax.ShapeDtypeStruct((num_tiles, 1, tile_b), jnp.float32),
        grid=(num_tiles,),
        in_specs=[
            pl.BlockSpec((tile_b, D), lambda i: (i, 0)),   # state: streamed
            pl.BlockSpec((D, H), lambda i: (0, 0)),        # W1: VMEM-resident
            pl.BlockSpec((1, H), lambda i: (0, 0)),        # b1
            pl.BlockSpec((H, H), lambda i: (0, 0)),        # W2
            pl.BlockSpec((1, H), lambda i: (0, 0)),        # b2
            pl.BlockSpec((1, H), lambda i: (0, 0)),        # w3 row (f32)
            pl.BlockSpec(memory_space=pltpu.MemorySpace.SMEM),  # b3 scalar
        ],
        out_specs=pl.BlockSpec((1, 1, tile_b), lambda i: (i, 0, 0)),
        compiler_params=pltpu.CompilerParams(
            dimension_semantics=("parallel",),
            vmem_limit_bytes=vmem_limit_bytes),
        cost_estimate=pl.CostEstimate(
            flops=flops, transcendentals=0, bytes_accessed=bytes_accessed),
    )(state_bf, w1_bf, b1_f, w2_bf, b2_f, w3_row, b3_sc)

    # Lane-dense (num_tiles, 1, TILE_B) -> flat (B,). This reshape+slice is the
    # squeeze_output=True / Squeeze(dim=-1) of the PyTorch module.
    return out.reshape(b_pad)[:B]


def init_params(key, state_dim, hidden_dim):
    """Deterministic synthetic parameters (not a checkpoint load)."""
    k1, k2, k3, k4, k5, k6 = jax.random.split(key, 6)
    w1 = jax.random.normal(k1, (state_dim, hidden_dim), jnp.float32) * 0.1
    b1 = jax.random.normal(k2, (1, hidden_dim), jnp.float32) * 0.01
    w2 = jax.random.normal(k3, (hidden_dim, hidden_dim), jnp.float32) * 0.1
    b2 = jax.random.normal(k4, (1, hidden_dim), jnp.float32) * 0.01
    w3 = jax.random.normal(k5, (hidden_dim, 1), jnp.float32) * 0.1
    b3 = jax.random.normal(k6, (1, 1), jnp.float32) * 0.01
    return (w1, b1, w2, b2, w3, b3)


def reference_forward(state, params):
    """Pure-JAX reference mirroring the PyTorch module. NOTE: layers 1/2 are
    rounded to bf16 here to match the kernel's MXU input dtype (f32
    accumulation); the true fp32 module differs by ~1e-3 relative error."""
    w1, b1, w2, b2, w3, b3 = params
    f32, bf16 = jnp.float32, jnp.bfloat16
    s = state.astype(bf16).astype(f32)
    h1 = jnp.maximum(s @ w1.astype(bf16).astype(f32) + b1, 0.0)
    h2 = jnp.maximum(h1.astype(bf16).astype(f32)
                     @ w2.astype(bf16).astype(f32) + b2, 0.0)
    v = h2 @ w3 + b3
    return v[:, 0]


if __name__ == "__main__":
    key = jax.random.PRNGKey(0)
    k_state, k_params, k_state2, k_params2 = jax.random.split(key, 4)

    # Check 1: small demo shapes (single tile, heavy batch padding).
    batch, state_dim, hidden_dim = 8, 16, 32
    state = jax.random.normal(k_state, (batch, state_dim), jnp.float32)
    params = init_params(k_params, state_dim, hidden_dim)

    out = jax.block_until_ready(value_function_forward(state, params))
    ref = reference_forward(state, params)
    assert out.shape == (batch,), f"unexpected output shape {out.shape}"
    assert jnp.allclose(out, ref, atol=5e-3, rtol=5e-3), (
        f"mismatch vs reference (max abs err {jnp.max(jnp.abs(out - ref)):.3e})")

    # Check 2: ragged batch with default tile_b — exercises the >=2-tile split
    # (v7x dual-core path) and the padding path.
    batch2, state_dim2, hidden_dim2 = 300, 16, 64
    state2 = jax.random.normal(k_state2, (batch2, state_dim2), jnp.float32)
    params2 = init_params(k_params2, state_dim2, hidden_dim2)
    out2 = jax.block_until_ready(value_function_forward(state2, params2))
    ref2 = reference_forward(state2, params2)
    assert out2.shape == (batch2,), f"unexpected output shape {out2.shape}"
    assert jnp.allclose(out2, ref2, atol=5e-3, rtol=5e-3), (
        f"mismatch vs reference (max abs err {jnp.max(jnp.abs(out2 - ref2)):.3e})")

    # Check 3: explicit small tile -> multi-step grid (3 tiles).
    out3 = jax.block_until_ready(
        value_function_forward(state2, params2, tile_b=128))
    assert out3.shape == (batch2,), f"unexpected output shape {out3.shape}"
    assert jnp.allclose(out3, ref2, atol=5e-3, rtol=5e-3), (
        f"mismatch vs reference (max abs err {jnp.max(jnp.abs(out3 - ref2)):.3e})")

    print("KERNEL_OK")
</pallas_src>

<mosaic_0001>
module attributes {stable_mosaic.version = 11 : i64} {
  func.func @_value_kernel(%arg0: i32, %arg1: memref<128x16xbf16, #tpu.memory_space<vmem>>, %arg2: memref<16x32xbf16, #tpu.memory_space<vmem>>, %arg3: memref<1x32xf32, #tpu.memory_space<vmem>>, %arg4: memref<32x32xbf16, #tpu.memory_space<vmem>>, %arg5: memref<1x32xf32, #tpu.memory_space<vmem>>, %arg6: memref<1x32xf32, #tpu.memory_space<vmem>>, %arg7: memref<1x1xf32, #tpu.memory_space<smem>>, %arg8: memref<1x1x128xf32, #tpu.memory_space<vmem>>) attributes {dimension_semantics = [#tpu.dimension_semantics<parallel>], iteration_bounds = array<i64: 1>, scalar_prefetch = 0 : i64, scratch_operands = 0 : i64, tpu.core_type = #tpu.core_type<tc>, window_params = [{transform_indices = @transform_0, window_bounds = array<i64: 128, 16>}, {pipeline_mode = #tpu.pipeline_mode<synchronous>, transform_indices = @transform_1, window_bounds = array<i64: 16, 32>}, {pipeline_mode = #tpu.pipeline_mode<synchronous>, transform_indices = @transform_2, window_bounds = array<i64: 1, 32>}, {pipeline_mode = #tpu.pipeline_mode<synchronous>, transform_indices = @transform_3, window_bounds = array<i64: 32, 32>}, {pipeline_mode = #tpu.pipeline_mode<synchronous>, transform_indices = @transform_4, window_bounds = array<i64: 1, 32>}, {pipeline_mode = #tpu.pipeline_mode<synchronous>, transform_indices = @transform_5, window_bounds = array<i64: 1, 32>}, {transform_indices = @transform_6, window_bounds = array<i64: 1, 1>}, {transform_indices = @transform_7, window_bounds = array<i64: 1, 1, 128>}]} {
    %c0 = arith.constant 0 : index
    %c0_0 = arith.constant 0 : index
    %0 = vector.load %arg1[%c0, %c0_0] : memref<128x16xbf16, #tpu.memory_space<vmem>>, vector<128x16xbf16>
    %c0_1 = arith.constant 0 : index
    %c0_2 = arith.constant 0 : index
    %1 = vector.load %arg2[%c0_1, %c0_2] : memref<16x32xbf16, #tpu.memory_space<vmem>>, vector<16x32xbf16>
    %cst = arith.constant dense<0.000000e+00> : vector<128x32xf32>
    %2 = tpu.matmul %0, %1, %cst {dimension_numbers = #tpu.dot_dimension_numbers<[1], [0], [0], [1], [0, 0, 1, 1], [], []>} : vector<128x16xbf16>, vector<16x32xbf16>, vector<128x32xf32> -> vector<128x32xf32>
    %c0_3 = arith.constant 0 : index
    %c0_4 = arith.constant 0 : index
    %3 = vector.load %arg3[%c0_3, %c0_4] : memref<1x32xf32, #tpu.memory_space<vmem>>, vector<1x32xf32>
    %4 = vector.broadcast %3 : vector<1x32xf32> to vector<128x32xf32>
    %5 = arith.addf %2, %4 : vector<128x32xf32>
    %cst_5 = arith.constant 0.000000e+00 : f32
    %6 = vector.broadcast %cst_5 : f32 to vector<128x32xf32>
    %7 = arith.maximumf %5, %6 : vector<128x32xf32>
    %8 = arith.truncf %7 : vector<128x32xf32> to vector<128x32xbf16>
    %c0_6 = arith.constant 0 : index
    %c0_7 = arith.constant 0 : index
    %9 = vector.load %arg4[%c0_6, %c0_7] : memref<32x32xbf16, #tpu.memory_space<vmem>>, vector<32x32xbf16>
    %cst_8 = arith.constant dense<0.000000e+00> : vector<128x32xf32>
    %10 = tpu.matmul %8, %9, %cst_8 {dimension_numbers = #tpu.dot_dimension_numbers<[1], [0], [0], [1], [0, 0, 1, 1], [], []>} : vector<128x32xbf16>, vector<32x32xbf16>, vector<128x32xf32> -> vector<128x32xf32>
    %c0_9 = arith.constant 0 : index
    %c0_10 = arith.constant 0 : index
    %11 = vector.load %arg5[%c0_9, %c0_10] : memref<1x32xf32, #tpu.memory_space<vmem>>, vector<1x32xf32>
    %12 = vector.broadcast %11 : vector<1x32xf32> to vector<128x32xf32>
    %13 = arith.addf %10, %12 : vector<128x32xf32>
    %cst_11 = arith.constant 0.000000e+00 : f32
    %14 = vector.broadcast %cst_11 : f32 to vector<128x32xf32>
    %15 = arith.maximumf %13, %14 : vector<128x32xf32>
    %c0_12 = arith.constant 0 : index
    %c0_13 = arith.constant 0 : index
    %16 = vector.load %arg6[%c0_12, %c0_13] : memref<1x32xf32, #tpu.memory_space<vmem>>, vector<1x32xf32>
    %cst_14 = arith.constant dense<0.000000e+00> : vector<1x128xf32>
    %17 = tpu.matmul %16, %15, %cst_14 {dimension_numbers = #tpu.dot_dimension_numbers<[1], [1], [0], [0], [0, 0, 1, 0], [], []>} : vector<1x32xf32>, vector<128x32xf32>, vector<1x128xf32> -> vector<1x128xf32>
    %c0_15 = arith.constant 0 : index
    %c0_16 = arith.constant 0 : index
    %18 = memref.load %arg7[%c0_15, %c0_16] : memref<1x1xf32, #tpu.memory_space<smem>>
    %19 = vector.broadcast %18 : f32 to vector<1x128xf32>
    %20 = arith.addf %17, %19 : vector<1x128xf32>
    %21 = vector.shape_cast %20 : vector<1x128xf32> to vector<1x1x128xf32>
    %c0_17 = arith.constant 0 : index
    %c0_18 = arith.constant 0 : index
    %c0_19 = arith.constant 0 : index
    %22 = vector.load %arg8[%c0_17, %c0_18, %c0_19] : memref<1x1x128xf32, #tpu.memory_space<vmem>>, vector<1x1x128xf32>
    tpu.vector_store %arg8[%c0_17, %c0_18, %c0_19], %21 {strides = array<i32>} : memref<1x1x128xf32, #tpu.memory_space<vmem>>, vector<1x1x128xf32>,
    return
  }
  func.func @transform_0(%arg0: i32) -> (i32, i32) {
    %c0_i32 = arith.constant 0 : i32
    %c0_i32_0 = arith.constant 0 : i32
    return %arg0, %c0_i32 : i32, i32
  }
  func.func @transform_1(%arg0: i32) -> (i32, i32) {
    %c0_i32 = arith.constant 0 : i32
    %c0_i32_0 = arith.constant 0 : i32
    %c0_i32_1 = arith.constant 0 : i32
    return %c0_i32, %c0_i32_0 : i32, i32
  }
  func.func @transform_2(%arg0: i32) -> (i32, i32) {
    %c0_i32 = arith.constant 0 : i32
    %c0_i32_0 = arith.constant 0 : i32
    %c0_i32_1 = arith.constant 0 : i32
    return %c0_i32, %c0_i32_0 : i32, i32
  }
  func.func @transform_3(%arg0: i32) -> (i32, i32) {
    %c0_i32 = arith.constant 0 : i32
    %c0_i32_0 = arith.constant 0 : i32
    %c0_i32_1 = arith.constant 0 : i32
    return %c0_i32, %c0_i32_0 : i32, i32
  }
  func.func @transform_4(%arg0: i32) -> (i32, i32) {
    %c0_i32 = arith.constant 0 : i32
    %c0_i32_0 = arith.constant 0 : i32
    %c0_i32_1 = arith.constant 0 : i32
    return %c0_i32, %c0_i32_0 : i32, i32
  }
  func.func @transform_5(%arg0: i32) -> (i32, i32) {
    %c0_i32 = arith.constant 0 : i32
    %c0_i32_0 = arith.constant 0 : i32
    %c0_i32_1 = arith.constant 0 : i32
    return %c0_i32, %c0_i32_0 : i32, i32
  }
  func.func @transform_6(%arg0: i32) -> (i32, i32) {
    %c0_i32 = arith.constant 0 : i32
    %c0_i32_0 = arith.constant 0 : i32
    %c0_i32_1 = arith.constant 0 : i32
    return %c0_i32, %c0_i32_0 : i32, i32
  }
  func.func @transform_7(%arg0: i32) -> (i32, i32, i32) {
    %c0_i32 = arith.constant 0 : i32
    %c0_i32_0 = arith.constant 0 : i32
    %c0_i32_1 = arith.constant 0 : i32
    return %arg0, %c0_i32, %c0_i32_0 : i32, i32, i32
  }
}

</mosaic_0001>

<bundles_post_ra>
// kernel: tpu_custom_call.1
= control target key start
LH: loop header
LB: loop body
LE: loop exit
PB: predicated region body
PF: predicated region fallthrough
CT: control target
= control target key end

     0   :  { %vm100_vm0 = vcmask 130048   ;;  %s887_s0 = inlined_call_operand.vmem [shape: bf16[128,16], index: 0, kind: input, shape index: {}]   ;;  %s888_s1 = inlined_call_operand.vmem [shape: bf16[16,32], index: 1, kind: input, shape index: {}]   ;;  %s889_s2 = inlined_call_operand.vmem [shape: f32[1,32], index: 2, kind: input, shape index: {}]   ;;  %s890_s3 = inlined_call_operand.vmem [shape: bf16[32,32], index: 3, kind: input, shape index: {}]   ;;  %s891_s4 = inlined_call_operand.vmem [shape: f32[1,32], index: 4, kind: input, shape index: {}]   ;;  %s892_s5 = inlined_call_operand.vmem [shape: f32[1,32], index: 5, kind: input, shape index: {}]   ;;  %s893_s6 = inlined_call_operand.<no memory space> [shape: f32[1,1], index: 6, kind: input, shape index: {}]   ;;  %s894_s7 = inlined_call_operand.hbm [shape: f32[1,1,128], index: 7, kind: output, shape index: {}]  }
   0x1   :  { %v704_v0 = vld [vmem:[%s888_s1] sm:$0xff]   ;;  %v706_v2 = vld [vmem:[%s887_s0 + $0x8] sm:$0xff]   ;;  %v707_v3 = vld [vmem:[%s887_s0 + $0x10] sm:$0xff]  }
   0x2   :  { %v705_v1 = vld [vmem:[%s887_s0] sm:$0xff]   ;;  %628 = vmatprep.subr.bf16.mxu1 %v704_v0  ;;  %v708_v4 = vld [vmem:[%s887_s0 + $0x18] sm:$0xff]   ;;  %v713_v5 = vld [vmem:[%s890_s3 + $0x8] sm:$0xff]  }
   0x3   :  { %629 = vmatpush3.bf16.msra.mxu1 %v704_v0  ;;  %630 = vmatprep.mubr.msk.bf16.mxu1 %vm100_vm0, %v705_v1  ;;  %v714_v6 = vld [vmem:[%s890_s3] sm:$0xff]  }
   0x4   :  { %v709_v7 = vld [vmem:[%s887_s0 + $0x20] sm:$0xff]   ;;  %646 = vmatprep.subr.bf16.mxu1 %v713_v5 }
   0x6   :  { %631 = vmatmul.mubr.msk.bf16.vlgmr.msra.gmra.mxu1 %vm100_vm0, %v706_v2 }
   0x7   :  { %634 = vmatprep.mubr.msk.bf16.mxu1 %vm100_vm0, %v707_v3 }
   0x8   :  { %13 = vsyncpa [#allocation4], 0  ;;  %647 = vmatpush3.bf16.msra.mxu1 %v713_v5  ;;  %v710_v8 = vld [vmem:[%s887_s0 + $0x28] sm:$0xff]   ;;  %v711_v9 = vld [vmem:[%s887_s0 + $0x30] sm:$0xff]   ;;  %vm269_vm1 = vcmask 261120   ;;  %vm738_vm2 = vmmov 0  }
   0x9   :  { %648 = vmatprep.subr.bf16.mxu1 %v714_v6  ;;  %v712_v10 = vld [vmem:[%s887_s0 + $0x38] sm:$0xff]   ;;  %v546_v13 = vld [vmem:[%s889_s2] ss:$0 sm:$0xff]  ;;  %s739_s26 = smov [#allocation3]  }
   0xa   :  { %s538_s27 = sshll.u32 %s739_s26, 4  ;;  %s539_s27 = int_to_ptr.vmem [resolvable:$true] %s538_s27 }
   0xb   :  { %s715_s28 = scalar_lea.vmem %s539_s27, 16  ;;  %s719_s29 = scalar_lea.vmem %s539_s27, 32 }
   0xc   :  { %649 = vmatpush3.bf16.msra.mxu1 %v714_v6  ;;  %p716_p0 = scmp.ne.s32.totalorder %s539_s27, %s715_s28  ;;  %p720_p1 = scmp.lt.s32.totalorder %s539_s27, %s539_s27 }
   0xd   :  { %p721_p2 = scmp.lt.s32.totalorder %s719_s29, %s715_s28 }
   0xe   :  { %635 = vmatmul.mubr.msk.bf16.gmra.mxu1 %vm100_vm0, %v708_v4  ;;  %v737_v4 = vmov 0.0  }
   0xf   :  { %638 = vmatprep.mubr.msk.bf16.mxu1 %vm100_vm0, %v709_v7  ;;  %666 = vmatprep.subr.mxu0 %v737_v4  ;;  %p722_p3 = por %p721_p2, %p720_p1 }
  0x10   :  { %698 = vmatprep.mubr.msk.f32.mxu0 %vm738_vm2, %v737_v4 }
  0x11   :  { %p723_p4 = pnand %p722_p3, %p716_p0 }
  0x16   :  { %639 = vmatmul.mubr.msk.bf16.gmra.mxu1 %vm100_vm0, %v710_v8 }
  0x17   :  { %642 = vmatprep.mubr.msk.bf16.mxu1 %vm100_vm0, %v711_v9 }
  0x1e   :  { %643 = vmatmul.mubr.msk.bf16.gmra.mxu1 %vm100_vm0, %v712_v10 }
  0xc6   :  { %v632_v11 = vpop.f32.mrf.mxu1 }
  0xc7   :  { %v168_v17 = vadd.f32 %v632_v11, %v546_v13 }
  0xc8   :  { %v159_v12 = vpop.f32.mrf.mxu1 }
  0xc9   :  { %v160_v15 = vadd.f32 %v546_v13, %v159_v12  ;;  %v224_v24 = vmax.f32 %v168_v17, 0.0 }
  0xca   :  { %v633_v14 = vpop.f32.mrf.mxu1 }
  0xcb   :  { %v171_v16 = vadd.f32 %v633_v14, %v546_v13  ;;  %v222_v22 = vmax.f32 %v160_v15, 0.0 }
  0xcc   :  { %v162_v18 = vpop.f32.mrf.mxu1 }
  0xcd   :  { %v163_v19 = vadd.f32 %v546_v13, %v162_v18  ;;  %v225_v20 = vmax.f32 %v171_v16, 0.0 }
  0xce   :  { %v636_v21 = vpop.f32.mrf.mxu1 }
  0xcf   :  { %v223_v23 = vmax.f32 %v163_v19, 0.0  ;;  %v239_v27 = vpack.c.bf16 %v225_v20, %v224_v24  ;;  %v184_v31 = vadd.f32 %v636_v21, %v546_v13  ;;  %v564_v19 = vld [vmem:[%s891_s4] ss:$0 sm:$0xff] }
  0xd0   :  { %v175_v25 = vpop.f32.mrf.mxu1 }
  0xd1   :  { %v238_v26 = vpack.c.bf16 %v223_v23, %v222_v22  ;;  %v176_v29 = vadd.f32 %v546_v13, %v175_v25  ;;  %v228_v38 = vmax.f32 %v184_v31, 0.0 }
  0xd2   :  { %v637_v28 = vpop.f32.mrf.mxu1 }
  0xd3   :  { %v187_v30 = vadd.f32 %v637_v28, %v546_v13  ;;  %650 = vmatprep.mubr.msk.bf16.mxu1 %vm269_vm1, %v238_v26  ;;  %v226_v36 = vmax.f32 %v176_v29, 0.0 }
  0xd4   :  { %v178_v32 = vpop.f32.mrf.mxu1  ;;  %651 = vmatmul.mubr.msk.bf16.vlgmr.msra.gmra.mxu1 %vm269_vm1, %v239_v27 }
  0xd5   :  { %v179_v33 = vadd.f32 %v546_v13, %v178_v32  ;;  %v229_v34 = vmax.f32 %v187_v30, 0.0 }
  0xd6   :  { %v640_v35 = vpop.f32.mrf.mxu1 }
  0xd7   :  { %v227_v37 = vmax.f32 %v179_v33, 0.0  ;;  %v241_v41 = vpack.c.bf16 %v229_v34, %v228_v38  ;;  %v200_v45 = vadd.f32 %v640_v35, %v546_v13 }
  0xd8   :  { %v191_v39 = vpop.f32.mrf.mxu1 }
  0xd9   :  { %v240_v40 = vpack.c.bf16 %v227_v37, %v226_v36  ;;  %v192_v43 = vadd.f32 %v546_v13, %v191_v39  ;;  %v232_v52 = vmax.f32 %v200_v45, 0.0 }
  0xda   :  { %v641_v42 = vpop.f32.mrf.mxu1 }
  0xdb   :  { %v203_v44 = vadd.f32 %v641_v42, %v546_v13  ;;  %654 = vmatprep.mubr.msk.bf16.mxu1 %vm269_vm1, %v240_v40  ;;  %v230_v50 = vmax.f32 %v192_v43, 0.0 }
  0xdc   :  { %v194_v46 = vpop.f32.mrf.mxu1  ;;  %655 = vmatmul.mubr.msk.bf16.gmra.mxu1 %vm269_vm1, %v241_v41 }
  0xdd   :  { %v195_v47 = vadd.f32 %v546_v13, %v194_v46  ;;  %v233_v48 = vmax.f32 %v203_v44, 0.0 }
  0xde   :  { %v644_v49 = vpop.f32.mrf.mxu1 }
  0xdf   :  { %v231_v51 = vmax.f32 %v195_v47, 0.0  ;;  %v243_v55 = vpack.c.bf16 %v233_v48, %v232_v52  ;;  %v216_v59 = vadd.f32 %v644_v49, %v546_v13 }
  0xe0   :  { %v207_v53 = vpop.f32.mrf.mxu1 }
  0xe1   :  { %v242_v54 = vpack.c.bf16 %v231_v51, %v230_v50  ;;  %v208_v57 = vadd.f32 %v546_v13, %v207_v53  ;;  %v236_v1 = vmax.f32 %v216_v59, 0.0 }
  0xe2   :  { %v645_v56 = vpop.f32.mrf.mxu1 }
  0xe3   :  { %v219_v58 = vadd.f32 %v645_v56, %v546_v13  ;;  %658 = vmatprep.mubr.msk.bf16.mxu1 %vm269_vm1, %v242_v54  ;;  %v234_v63 = vmax.f32 %v208_v57, 0.0  ;;  %v407_v54 = vld [vmem:[%s892_s5] sm:$0x1] }
  0xe4   :  { %v210_v60 = vpop.f32.mrf.mxu1  ;;  %659 = vmatmul.mubr.msk.bf16.gmra.mxu1 %vm269_vm1, %v243_v55  ;;  %v409_v55 = vstv %s893_s6 }
  0xe5   :  { %v211_v61 = vadd.f32 %v546_v13, %v210_v60  ;;  %v237_v62 = vmax.f32 %v219_v58, 0.0 }
  0xe7   :  { %v235_v0 = vmax.f32 %v211_v61, 0.0  ;;  %v245_v3 = vpack.c.bf16 %v237_v62, %v236_v1 }
  0xe9   :  { %v244_v2 = vpack.c.bf16 %v235_v0, %v234_v63 }
  0xeb   :  { %662 = vmatprep.mubr.msk.bf16.mxu1 %vm269_vm1, %v244_v2 }
  0xec   :  { %663 = vmatmul.mubr.msk.bf16.gmra.mxu1 %vm269_vm1, %v245_v3 }
 0x194   :  { %v834_v5 = vpop.f32.mrf.mxu1 }
 0x195   :  { %v337_v47 = vadd.f32 %v834_v5, %v564_v19 }
 0x196   :  { %v836_v6 = vpop.f32.mrf.mxu1 }
 0x197   :  { %v393_v49 = vmax.f32 %v337_v47, 0.0  ;;  %v329_v51 = vadd.f32 %v564_v19, %v836_v6 }
 0x198   :  { %v653_v7 = vpop.f32.mrf.mxu1 }
 0x199   :  { %v340_v45 = vadd.f32 %v653_v7, %v564_v19  ;;  %v391_v53 = vmax.f32 %v329_v51, 0.0 }
 0x19a   :  { %v838_v8 = vpop.f32.mrf.mxu1 }
 0x19b   :  { %v394_v48 = vmax.f32 %v340_v45, 0.0  ;;  %v332_v50 = vadd.f32 %v564_v19, %v838_v8 }
 0x19c   :  { %v656_v9 = vpop.f32.mrf.mxu1 }
 0x19d   :  { %v353_v39 = vadd.f32 %v656_v9, %v564_v19  ;;  %v392_v52 = vmax.f32 %v332_v50, 0.0 }
 0x19e   :  { %v344_v10 = vpop.f32.mrf.mxu1 }
 0x19f   :  { %v397_v41 = vmax.f32 %v353_v39, 0.0  ;;  %v345_v43 = vadd.f32 %v564_v19, %v344_v10 }
 0x1a0   :  { %v657_v11 = vpop.f32.mrf.mxu1 }
 0x1a1   :  { %v356_v37 = vadd.f32 %v657_v11, %v564_v19  ;;  %v395_v46 = vmax.f32 %v345_v43, 0.0 }
 0x1a2   :  { %v347_v12 = vpop.f32.mrf.mxu1 }
 0x1a3   :  { %v398_v40 = vmax.f32 %v356_v37, 0.0  ;;  %v348_v42 = vadd.f32 %v564_v19, %v347_v12 }
 0x1a4   :  { %v660_v13 = vpop.f32.mrf.mxu1 }
 0x1a5   :  { %v369_v31 = vadd.f32 %v660_v13, %v564_v19  ;;  %v396_v44 = vmax.f32 %v348_v42, 0.0 }
 0x1a6   :  { %v360_v14 = vpop.f32.mrf.mxu1 }
 0x1a7   :  { %v401_v33 = vmax.f32 %v369_v31, 0.0  ;;  %v361_v35 = vadd.f32 %v564_v19, %v360_v14 }
 0x1a8   :  { %v661_v15 = vpop.f32.mrf.mxu1 }
 0x1a9   :  { %v372_v29 = vadd.f32 %v661_v15, %v564_v19  ;;  %v399_v38 = vmax.f32 %v361_v35, 0.0 }
 0x1aa   :  { %v363_v16 = vpop.f32.mrf.mxu1 }
 0x1ab   :  { %v402_v32 = vmax.f32 %v372_v29, 0.0  ;;  %v364_v34 = vadd.f32 %v564_v19, %v363_v16 }
 0x1ac   :  { %v664_v17 = vpop.f32.mrf.mxu1 }
 0x1ad   :  { %v385_v22 = vadd.f32 %v664_v17, %v564_v19  ;;  %v400_v36 = vmax.f32 %v364_v34, 0.0 }
 0x1ae   :  { %v376_v18 = vpop.f32.mrf.mxu1 }
 0x1af   :  { %v405_v25 = vmax.f32 %v385_v22, 0.0  ;;  %v377_v27 = vadd.f32 %v564_v19, %v376_v18 }
 0x1b0   :  { %v665_v20 = vpop.f32.mrf.mxu1 }
 0x1b1   :  { %v388_v21 = vadd.f32 %v665_v20, %v564_v19  ;;  %v403_v30 = vmax.f32 %v377_v27, 0.0 }
 0x1b2   :  { %v379_v24 = vpop.f32.mrf.mxu1 }
 0x1b3   :  { %v406_v23 = vmax.f32 %v388_v21, 0.0  ;;  %v380_v26 = vadd.f32 %v564_v19, %v379_v24 }
 0x1b5   :  { %667 = vmatpush3.xpose.msk.msra.mxu0 %vm269_vm1, %v406_v23  ;;  %v404_v28 = vmax.f32 %v380_v26, 0.0 }
 0x1b6   :  { %668 = vmatprep.subr.mxu0 %v737_v4 }
 0x1b9   :  { %669 = vmatpush3.xpose.msk.msra.mxu0 %vm269_vm1, %v405_v25 }
 0x1ba   :  { %670 = vmatprep.subr.mxu0 %v737_v4 }
 0x1bd   :  { %671 = vmatpush3.xpose.msk.msra.mxu0 %vm269_vm1, %v404_v28 }
 0x1be   :  { %672 = vmatprep.subr.mxu0 %v737_v4 }
 0x1c1   :  { %673 = vmatpush3.xpose.msk.msra.mxu0 %vm269_vm1, %v403_v30 }
 0x1c2   :  { %674 = vmatprep.subr.mxu0 %v737_v4 }
 0x1c5   :  { %675 = vmatpush3.xpose.msk.msra.mxu0 %vm269_vm1, %v402_v32 }
 0x1c6   :  { %676 = vmatprep.subr.mxu0 %v737_v4 }
 0x1c9   :  { %677 = vmatpush3.xpose.msk.msra.mxu0 %vm269_vm1, %v401_v33 }
 0x1ca   :  { %678 = vmatprep.subr.mxu0 %v737_v4 }
 0x1cd   :  { %679 = vmatpush3.xpose.msk.msra.mxu0 %vm269_vm1, %v400_v36 }
 0x1ce   :  { %680 = vmatprep.subr.mxu0 %v737_v4 }
 0x1d1   :  { %681 = vmatpush3.xpose.msk.msra.mxu0 %vm269_vm1, %v399_v38 }
 0x1d2   :  { %682 = vmatprep.subr.mxu0 %v737_v4 }
 0x1d5   :  { %683 = vmatpush3.xpose.msk.msra.mxu0 %vm269_vm1, %v398_v40 }
 0x1d6   :  { %684 = vmatprep.subr.mxu0 %v737_v4 }
 0x1d9   :  { %685 = vmatpush3.xpose.msk.msra.mxu0 %vm269_vm1, %v397_v41 }
 0x1da   :  { %686 = vmatprep.subr.mxu0 %v737_v4 }
 0x1dd   :  { %687 = vmatpush3.xpose.msk.msra.mxu0 %vm269_vm1, %v396_v44 }
 0x1de   :  { %688 = vmatprep.subr.mxu0 %v737_v4 }
 0x1e1   :  { %689 = vmatpush3.xpose.msk.msra.mxu0 %vm269_vm1, %v395_v46 }
 0x1e2   :  { %690 = vmatprep.subr.mxu0 %v737_v4 }
 0x1e5   :  { %691 = vmatpush3.xpose.msk.msra.mxu0 %vm269_vm1, %v394_v48 }
 0x1e6   :  { %692 = vmatprep.subr.mxu0 %v737_v4 }
 0x1e9   :  { %693 = vmatpush3.xpose.msk.msra.mxu0 %vm269_vm1, %v393_v49 }
 0x1ea   :  { %694 = vmatprep.subr.mxu0 %v737_v4 }
 0x1ed   :  { %695 = vmatpush3.xpose.msk.msra.mxu0 %vm269_vm1, %v392_v52 }
 0x1ee   :  { %696 = vmatprep.subr.mxu0 %v737_v4 }
 0x1f1   :  { %697 = vmatpush3.xpose.msk.msra.mxu0 %vm269_vm1, %v391_v53 }
 0x1f4   :  { %699 = vmatmul.mubr.msk.f32.vlgmr.msra.gmra.mxu0 %vm269_vm1, %v407_v54 }
 0x2b4   :  { %v527_v56 = vpop.f32.mrf.mxu0 }
 0x2b5   :  { %v528_v57 = vadd.f32 %v527_v56, %v409_v55 }
 0x2b6   :  { %v700_v58 = vpop.f32.mrf.mxu0 }
 0x2b7   :  { %531 = vst [vmem:[#allocation3] sm:$0x1] %v528_v57 }
 0x2b8   :  { %726 = shalt.err (!%p723_p4)
}
 0x2b9   :  { %541 = dma.vmem_to_hbm [thread:$0]  %s539_s27, 16, %s894_s7, [#allocation4]  }
 0x2ba   :  { %735 = dma.done.wait [#allocation4], 16  }
 0x2bb   :  { %736 = vsyncadd [#allocation4], 4294967280 }
 0x2bc   :  { %545 = vsyncpa [#allocation4], 1 }

</bundles_post_ra>
